<compile_context>
chip_gen: v7x
topology: tpu7x:2x2x1
jax: 0.10.0
libtpu: 0.0.40
codegen_flags: <defaults>
</compile_context>

<pallas_src>
import functools
import math

import numpy as np
import jax
import jax.numpy as jnp
from jax.experimental import pallas as pl
from jax.experimental.pallas import tpu as pltpu


def _maxpool_kernel(x_ref, sel_ref, o_ref, *, w_e):
    """x_ref:   (t_rows, g*2*w_e)  g folded row-pair strips per row
    sel_ref: (g*2*w_e, g*w_out)  one-hot lane-compaction selector
    o_ref:   (t_rows, g*w_out)
    """
    x = x_ref[...]
    # Vertical max: pair each lane with the lane w_e positions to its left
    # (pltpu.roll == jnp.roll: out[i] = in[(i - shift) % n]); valid at lane
    # offsets [w_e, 2*w_e) inside every strip.
    v = jnp.maximum(x, pltpu.roll(x, shift=w_e, axis=1))
    # Horizontal max: pair each lane with the previous lane; the full 2x2
    # window max now sits at lane s*2*w_e + w_e + 2*j + 1.
    h = jnp.maximum(v, pltpu.roll(v, shift=1, axis=1))
    # Compact the window maxima into a lane-dense output row with one exact
    # one-hot selection matmul (values pass through the MXU exactly).
    o_ref[...] = jnp.dot(
        h, sel_ref[...], preferred_element_type=jnp.float32
    ).astype(o_ref.dtype)


@functools.lru_cache(maxsize=None)
def _selector_np(g, w_out):
    """One-hot (g*2*w_e, g*w_out) selector: picks h[:, s*2*w_e + w_e + 2j + 1]."""
    w_e = 2 * w_out
    l_in, l_out = g * 2 * w_e, g * w_out
    sel = np.zeros((l_in, l_out), np.float32)
    q = np.arange(l_out)
    s, j = q // w_out, q % w_out
    sel[s * 2 * w_e + w_e + 2 * j + 1, q] = 1.0
    return sel


def _choose_row_tile(rows, max_rows):
    """Multiple-of-8 tile that (preferably) divides `rows` with an even block
    count (balanced v7x megacore split); falls back gracefully."""
    cap = min(max_rows, rows)
    if rows <= 8 or cap < 8:
        return rows                       # full-extent block (allowed by Mosaic)
    cap8 = (cap // 8) * 8
    fallback = None
    for t in range(cap8, 7, -8):
        if rows % t == 0:
            if (rows // t) % 2 == 0:
                return t                  # exact divisor AND even block count
            if fallback is None:
                fallback = t              # exact divisor, odd block count
    return fallback if fallback is not None else cap8


def maxpool2d_2x2(x, *, block_rows=1024, vmem_limit_bytes=48 * 1024 * 1024):
    """PyTorch nn.MaxPool2d(2) forward. x: (N, C, H, W) -> (N, C, H//2, W//2)."""
    N, C, H, W = x.shape
    h_out, w_out = H // 2, W // 2
    if h_out == 0 or w_out == 0:
        return jnp.zeros((N, C, h_out, w_out), x.dtype)
    if (H, W) != (2 * h_out, 2 * w_out):
        # Floor mode: drop trailing odd row/column (materializes a strided
        # copy; no-op for even H, W).
        x = x[:, :, : 2 * h_out, : 2 * w_out]

    w_e = 2 * w_out
    n_rows = N * C * h_out
    # Fold g consecutive row-pair strips per kernel row so the output block's
    # lane width g*w_out is (close to) >= 128 -> unmasked lane-dense stores.
    g = math.gcd(max(1, 128 // w_out), n_rows)
    rows_f = n_rows // g
    l_in, l_out = g * 2 * w_e, g * w_out

    x_f = x.reshape(rows_f, l_in)                       # free contiguous reshape
    sel = jnp.asarray(_selector_np(g, w_out), x.dtype)  # tiny, cached per (g, w_out)

    t_rows = _choose_row_tile(rows_f, block_rows)
    grid = (pl.cdiv(rows_f, t_rows),)

    out = pl.pallas_call(
        functools.partial(_maxpool_kernel, w_e=w_e),
        out_shape=jax.ShapeDtypeStruct((rows_f, l_out), x.dtype),
        grid=grid,
        in_specs=[
            pl.BlockSpec((t_rows, l_in), lambda i: (i, 0)),
            # Constant index_map -> fetched once per core; footprint <= ~1 MiB,
            # so default double-buffering is harmless.
            pl.BlockSpec((l_in, l_out), lambda i: (0, 0)),
        ],
        out_specs=pl.BlockSpec((t_rows, l_out), lambda i: (i, 0)),
        compiler_params=pltpu.CompilerParams(
            dimension_semantics=("parallel",),
            vmem_limit_bytes=vmem_limit_bytes,
        ),
    )(x_f, sel)
    return out.reshape(N, C, h_out, w_out)


def _reference(x):
    N, C, H, W = x.shape
    return x[:, :, : (H // 2) * 2, : (W // 2) * 2].reshape(
        N, C, H // 2, 2, W // 2, 2
    ).max(axis=(3, 5))


if __name__ == "__main__":
    key = jax.random.PRNGKey(0)

    # Small folded case (w_out < 128 -> g-folding path, single grid step).
    x1 = jax.random.normal(key, (2, 4, 16, 16), jnp.float32)
    o1 = jax.block_until_ready(maxpool2d_2x2(x1))
    r1 = _reference(x1)
    assert o1.shape == r1.shape
    assert jnp.allclose(o1, r1, rtol=1e-4, atol=1e-5), float(jnp.max(jnp.abs(o1 - r1)))

    # Unfolded case (w_out = 128, g = 1).
    x2 = jax.random.normal(jax.random.PRNGKey(1), (1, 2, 8, 256), jnp.float32)
    o2 = jax.block_until_ready(maxpool2d_2x2(x2))
    r2 = _reference(x2)
    assert jnp.allclose(o2, r2, rtol=1e-4, atol=1e-5), float(jnp.max(jnp.abs(o2 - r2)))

    # bf16 end-to-end, multi-block grid (even block count).
    x3 = jax.random.normal(jax.random.PRNGKey(2), (2, 4, 16, 64), jnp.bfloat16)
    o3 = jax.block_until_ready(maxpool2d_2x2(x3, block_rows=8))
    r3 = _reference(x3)
    assert jnp.allclose(o3.astype(jnp.float32), r3.astype(jnp.float32),
                        rtol=1e-2, atol=1e-2)

    print("KERNEL_OK")
</pallas_src>

<mosaic_0001>
module attributes {stable_mosaic.version = 11 : i64} {
  func.func @_maxpool_kernel(%arg0: i32, %arg1: memref<4x512xf32, #tpu.memory_space<vmem>>, %arg2: memref<512x128xf32, #tpu.memory_space<vmem>>, %arg3: memref<4x128xf32, #tpu.memory_space<vmem>>) attributes {dimension_semantics = [#tpu.dimension_semantics<parallel>], iteration_bounds = array<i64: 1>, scalar_prefetch = 0 : i64, scratch_operands = 0 : i64, tpu.core_type = #tpu.core_type<tc>, window_params = [{transform_indices = @transform_0, window_bounds = array<i64: 4, 512>}, {pipeline_mode = #tpu.pipeline_mode<synchronous>, transform_indices = @transform_1, window_bounds = array<i64: 512, 128>}, {transform_indices = @transform_2, window_bounds = array<i64: 4, 128>}]} {
    %c0 = arith.constant 0 : index
    %c0_0 = arith.constant 0 : index
    %0 = vector.load %arg1[%c0, %c0_0] : memref<4x512xf32, #tpu.memory_space<vmem>>, vector<4x512xf32>
    %c16_i32 = arith.constant 16 : i32
    %1 = tpu.dynamic_rotate %0 by %c16_i32 dim 1 : vector<4x512xf32>, i32 -> vector<4x512xf32>
    %2 = arith.maximumf %0, %1 : vector<4x512xf32>
    %c1_i32 = arith.constant 1 : i32
    %3 = tpu.dynamic_rotate %2 by %c1_i32 dim 1 : vector<4x512xf32>, i32 -> vector<4x512xf32>
    %4 = arith.maximumf %2, %3 : vector<4x512xf32>
    %c0_1 = arith.constant 0 : index
    %c0_2 = arith.constant 0 : index
    %5 = vector.load %arg2[%c0_1, %c0_2] : memref<512x128xf32, #tpu.memory_space<vmem>>, vector<512x128xf32>
    %cst = arith.constant dense<0.000000e+00> : vector<4x128xf32>
    %6 = tpu.matmul %4, %5, %cst {dimension_numbers = #tpu.dot_dimension_numbers<[1], [0], [0], [1], [0, 0, 1, 1], [], []>} : vector<4x512xf32>, vector<512x128xf32>, vector<4x128xf32> -> vector<4x128xf32>
    %c0_3 = arith.constant 0 : index
    %c0_4 = arith.constant 0 : index
    %7 = vector.load %arg3[%c0_3, %c0_4] : memref<4x128xf32, #tpu.memory_space<vmem>>, vector<4x128xf32>
    tpu.vector_store %arg3[%c0_3, %c0_4], %6 {strides = array<i32>} : memref<4x128xf32, #tpu.memory_space<vmem>>, vector<4x128xf32>,
    return
  }
  func.func @transform_0(%arg0: i32) -> (i32, i32) {
    %c0_i32 = arith.constant 0 : i32
    %c0_i32_0 = arith.constant 0 : i32
    return %arg0, %c0_i32 : i32, i32
  }
  func.func @transform_1(%arg0: i32) -> (i32, i32) {
    %c0_i32 = arith.constant 0 : i32
    %c0_i32_0 = arith.constant 0 : i32
    %c0_i32_1 = arith.constant 0 : i32
    return %c0_i32, %c0_i32_0 : i32, i32
  }
  func.func @transform_2(%arg0: i32) -> (i32, i32) {
    %c0_i32 = arith.constant 0 : i32
    %c0_i32_0 = arith.constant 0 : i32
    return %arg0, %c0_i32 : i32, i32
  }
}

</mosaic_0001>

<bundles_post_ra>
// kernel: tpu_custom_call.1
= control target key start
LH: loop header
LB: loop body
LE: loop exit
PB: predicated region body
PF: predicated region fallthrough
CT: control target
= control target key end

     0   :  { %7 = vsyncpa [#allocation3], 0  ;;  %s631_s0 = inlined_call_operand.hbm [shape: f32[4,512], index: 0, kind: input, shape index: {}]   ;;  %s632_s1 = inlined_call_operand.hbm [shape: f32[512,128], index: 1, kind: input, shape index: {}]   ;;  %s633_s2 = inlined_call_operand.hbm [shape: f32[4,128], index: 2, kind: output, shape index: {}]  }
   0x1   :  { %8 = vsyncpa [#allocation6], 0 }
   0x2   :  { %9 = vsyncpa [#allocation4], 0  ;;  %s542_s9 = smov [#allocation2]   ;;  %s543_s11 = smov [#allocation5]  }
   0x3   :  { %s16_s10 = sshll.u32 %s542_s9, 4  ;;  %s25_s12 = sshll.u32 %s543_s11, 4  ;;  %s17_s10 = int_to_ptr.vmem [resolvable:$true] %s16_s10  ;;  %s564_s12 = int_to_ptr.vmem [resolvable:$true] %s25_s12 }
   0x4   :  { %s470_s15 = scalar_lea.hbm %s631_s0, 256 }
   0x5   :  { %p471_p0 = scmp.ne.s32.totalorder %s631_s0, %s470_s15  ;;  %p474_p1 = scmp.lt.u32.totalorder %s470_s15, %s631_s0 }
   0x7   :  { %p476_p2 = pnand %p474_p1, %p471_p0 }
   0x9   :  { %479 = shalt.err (!%p476_p2)
}
   0xa   :  { %s480_s20 = scalar_lea.vmem %s17_s10, 256  ;;  %p485_p4 = scmp.lt.s32.totalorder %s17_s10, %s17_s10 }
   0xb   :  { %p481_p3 = scmp.ne.s32.totalorder %s17_s10, %s480_s20  ;;  %p486_p5 = scmp.lt.s32.totalorder %s480_s20, %s480_s20 }
   0xd   :  { %p487_p6 = por %p486_p5, %p485_p4 }
   0xf   :  { %p488_p7 = pnand %p487_p6, %p481_p3 }
  0x11   :  { %491 = shalt.err (!%p488_p7)
}
  0x12   :  { %19 = dma.hbm_to_vmem [thread:$0]  %s631_s0, 256, %s17_s10, [#allocation3]  }
  0x13   :  { %s492_s25 = scalar_lea.hbm %s632_s1, 8192 }
  0x14   :  { %p493_p8 = scmp.ne.s32.totalorder %s632_s1, %s492_s25  ;;  %p496_p9 = scmp.lt.u32.totalorder %s492_s25, %s632_s1 }
  0x16   :  { %p498_p10 = pnand %p496_p9, %p493_p8 }
  0x18   :  { %501 = shalt.err (!%p498_p10)
}
  0x19   :  { %s502_s30 = scalar_lea.vmem %s564_s12, 8192  ;;  %p507_p12 = scmp.lt.s32.totalorder %s564_s12, %s564_s12 }
  0x1a   :  { %p503_p11 = scmp.ne.s32.totalorder %s564_s12, %s502_s30  ;;  %p508_p13 = scmp.lt.s32.totalorder %s502_s30, %s502_s30 }
  0x1c   :  { %p509_p0 = por %p508_p13, %p507_p12 }
  0x1e   :  { %p510_p1 = pnand %p509_p0, %p503_p11 }
  0x20   :  { %513 = shalt.err (!%p510_p1)
}
  0x21   :  { %s544_s0 = smov 128   ;;  %s545_s3 = smov 8  }
  0x22   :  { %31 = dma.hbm_to_vmem [thread:$0]  %s632_s1, 8192, %s564_s12, [#allocation6], %s544_s0, %s544_s0, %s545_s3  }
  0x23   :  { %536 = dma.done.wait [#allocation3], 256  }
  0x24   :  { %537 = vsyncadd [#allocation3], 4294967040 }
  0x25   :  { %538 = dma.done.wait [#allocation6], 8192  }
  0x26   :  { %539 = vsyncadd [#allocation6], 4294959104  ;;  %v595_v0 = vld [vmem:[#allocation2 + $0x8] sm:$0xff]  ;;  %v597_v1 = vld [vmem:[#allocation2] sm:$0xff]  ;;  %s546_s6 = smov 16   ;;  %s547_s1 = smov 1  }
  0x27   :  { %50 = vrot.lane.b32.xlu1 %v595_v0, %s546_s6  ;;  %46 = vrot.lane.b32.xlu0 %v597_v1, %s546_s6  ;;  %v43_v2 = vcombine.high %v595_v0, %v595_v0  ;;  %v42_v3 = vcombine.high %v597_v1, %v597_v1  ;;  %v116_v4 = vld [vmem:[#allocation5 + $0x80] sm:$0xff]  ;;  %v117_v5 = vld [vmem:[#allocation5 + $0x88] sm:$0xff]  ;;  %v118_v15 = vld [vmem:[#allocation5 + $0x90] sm:$0xff]  ;;  %s548_s7 = smov [#allocation7]  }
  0x28   :  { %v148_v6 = vld [vmem:[#allocation5 + $0x180] sm:$0xff]  ;;  %v397_v7 = vpack.c.bf16 %v117_v5, %v116_v4  ;;  %v149_v8 = vld [vmem:[#allocation5 + $0x188] sm:$0xff]  ;;  %v119_v17 = vld [vmem:[#allocation5 + $0x98] sm:$0xff]  ;;  %s317_s8 = sshll.u32 %s548_s7, 4  ;;  %s318_s8 = int_to_ptr.vmem [resolvable:$true] %s317_s8 }
  0x29   :  { %v100_v9 = vld [vmem:[#allocation5] sm:$0xff]  ;;  %v101_v10 = vld [vmem:[#allocation5 + $0x8] sm:$0xff]  ;;  %v429_v11 = vpack.c.bf16 %v149_v8, %v148_v6  ;;  %v150_v18 = vld [vmem:[#allocation5 + $0x190] sm:$0xff]  ;;  %v401_v20 = vpack.c.bf16 %v119_v17, %v118_v15  ;;  %s514_s9 = scalar_lea.vmem %s318_s8, 64  ;;  %p519_p3 = scmp.lt.s32.totalorder %s318_s8, %s318_s8 }
  0x2a   :  { %v399_v12 = vpack.c.bf16 %v101_v10, %v100_v9  ;;  %v132_v13 = vld [vmem:[#allocation5 + $0x100] sm:$0xff]  ;;  %v133_v14 = vld [vmem:[#allocation5 + $0x108] sm:$0xff]  ;;  %398 = vmatprep.subr.bf16.mxu0 %v397_v7  ;;  %v151_v19 = vld [vmem:[#allocation5 + $0x198] sm:$0xff]  ;;  %p515_p2 = scmp.ne.s32.totalorder %s318_s8, %s514_s9  ;;  %p520_p4 = scmp.lt.s32.totalorder %s514_s9, %s514_s9 }
  0x2b   :  { %52 = vrot.lane.b32.xlu1 %v43_v2, %s546_s6  ;;  %48 = vrot.lane.b32.xlu0 %v42_v3, %s546_s6  ;;  %v431_v16 = vpack.c.bf16 %v133_v14, %v132_v13  ;;  %v433_v21 = vpack.c.bf16 %v151_v19, %v150_v18  ;;  %v102_v22 = vld [vmem:[#allocation5 + $0x10] sm:$0xff]  ;;  %v103_v23 = vld [vmem:[#allocation5 + $0x18] sm:$0xff]  ;;  %v120_v27 = vld [vmem:[#allocation5 + $0xa0] sm:$0xff]  ;;  %v54_v2 = vlaneseq }
  0x2c   :  { %430 = vmatprep.subr.bf16.mxu1 %v429_v11  ;;  %400 = vmatpush3.bf16.msra.mxu0 %v399_v12  ;;  %v134_v24 = vld [vmem:[#allocation5 + $0x110] sm:$0xff]  ;;  %v403_v25 = vpack.c.bf16 %v103_v23, %v102_v22  ;;  %v135_v26 = vld [vmem:[#allocation5 + $0x118] sm:$0xff]  ;;  %v121_v28 = vld [vmem:[#allocation5 + $0xa8] sm:$0xff]  ;;  %p521_p5 = por %p520_p4, %p519_p3 }
  0x2d   :  { %432 = vmatpush3.bf16.msra.mxu1 %v431_v16  ;;  %402 = vmatprep.subr.bf16.mxu0 %v401_v20  ;;  %v435_v29 = vpack.c.bf16 %v135_v26, %v134_v24  ;;  %v405_v30 = vpack.c.bf16 %v121_v28, %v120_v27  ;;  %v152_v31 = vld [vmem:[#allocation5 + $0x1a0] sm:$0xff]  ;;  %v153_v32 = vld [vmem:[#allocation5 + $0x1a8] sm:$0xff]  ;;  %v122_v39 = vld [vmem:[#allocation5 + $0xb0] sm:$0xff]  ;;  %v605_v10 = vand.u32 127, %v54_v2 }
  0x2e   :  { %434 = vmatprep.subr.bf16.mxu1 %v433_v21  ;;  %v104_v33 = vld [vmem:[#allocation5 + $0x20] sm:$0xff]  ;;  %v437_v34 = vpack.c.bf16 %v153_v32, %v152_v31  ;;  %v105_v35 = vld [vmem:[#allocation5 + $0x28] sm:$0xff]  ;;  %v123_v40 = vld [vmem:[#allocation5 + $0xb8] sm:$0xff]  ;;  %p522_p6 = pnand %p521_p5, %p515_p2 }
  0x2f   :  { %v136_v36 = vld [vmem:[#allocation5 + $0x120] sm:$0xff]  ;;  %v137_v37 = vld [vmem:[#allocation5 + $0x128] sm:$0xff]  ;;  %v407_v38 = vpack.c.bf16 %v105_v35, %v104_v33  ;;  %v154_v41 = vld [vmem:[#allocation5 + $0x1b0] sm:$0xff]  ;;  %v409_v43 = vpack.c.bf16 %v123_v40, %v122_v39  ;;  %vm56_vm0 = vcmp.lt.s32.totalorder %v605_v10, 16  ;;  %vm85_vm1 = vcmp.lt.s32.totalorder %v605_v10, 1 }
  0x30   :  { %404 = vmatpush3.bf16.msra.mxu0 %v403_v25  ;;  %v439_v42 = vpack.c.bf16 %v137_v37, %v136_v36  ;;  %v155_v44 = vld [vmem:[#allocation5 + $0x1b8] sm:$0xff]  ;;  %v106_v45 = vld [vmem:[#allocation5 + $0x30] sm:$0xff]  ;;  %v124_v50 = vld [vmem:[#allocation5 + $0xc0] sm:$0xff] }
  0x31   :  { %436 = vmatpush3.bf16.msra.mxu1 %v435_v29  ;;  %406 = vmatprep.subr.bf16.mxu0 %v405_v30  ;;  %v107_v46 = vld [vmem:[#allocation5 + $0x38] sm:$0xff]  ;;  %v441_v47 = vpack.c.bf16 %v155_v44, %v154_v41  ;;  %v138_v48 = vld [vmem:[#allocation5 + $0x130] sm:$0xff]  ;;  %v125_v51 = vld [vmem:[#allocation5 + $0xc8] sm:$0xff] }
  0x32   :  { %438 = vmatprep.subr.bf16.mxu1 %v437_v34  ;;  %v139_v49 = vld [vmem:[#allocation5 + $0x138] sm:$0xff]  ;;  %v156_v52 = vld [vmem:[#allocation5 + $0x1c0] sm:$0xff]  ;;  %v157_v53 = vld [vmem:[#allocation5 + $0x1c8] sm:$0xff]  ;;  %v411_v54 = vpack.c.bf16 %v107_v46, %v106_v45  ;;  %v413_v56 = vpack.c.bf16 %v125_v51, %v124_v50 }
  0x33   :  { %v443_v55 = vpack.c.bf16 %v139_v49, %v138_v48  ;;  %v108_v57 = vld [vmem:[#allocation5 + $0x40] sm:$0xff]  ;;  %v109_v58 = vld [vmem:[#allocation5 + $0x48] sm:$0xff]  ;;  %v445_v59 = vpack.c.bf16 %v157_v53, %v156_v52  ;;  %v126_v3 = vld [vmem:[#allocation5 + $0xd0] sm:$0xff] }
  0x34   :  { %408 = vmatpush3.bf16.msra.mxu0 %v407_v38  ;;  %v140_v60 = vld [vmem:[#allocation5 + $0x140] sm:$0xff]  ;;  %v141_v61 = vld [vmem:[#allocation5 + $0x148] sm:$0xff]  ;;  %v415_v62 = vpack.c.bf16 %v109_v58, %v108_v57  ;;  %v127_v4 = vld [vmem:[#allocation5 + $0xd8] sm:$0xff] }
  0x35   :  { %440 = vmatpush3.bf16.msra.mxu1 %v439_v42  ;;  %410 = vmatprep.subr.bf16.mxu0 %v409_v43  ;;  %v447_v63 = vpack.c.bf16 %v141_v61, %v140_v60  ;;  %v158_v5 = vld [vmem:[#allocation5 + $0x1d0] sm:$0xff]  ;;  %v417_v6 = vpack.c.bf16 %v127_v4, %v126_v3  ;;  %v159_v7 = vld [vmem:[#allocation5 + $0x1d8] sm:$0xff]  ;;  %v128_v18 = vld [vmem:[#allocation5 + $0xe0] sm:$0xff] }
  0x36   :  { %442 = vmatprep.subr.bf16.mxu1 %v441_v47  ;;  %v110_v8 = vld [vmem:[#allocation5 + $0x50] sm:$0xff]  ;;  %v111_v9 = vld [vmem:[#allocation5 + $0x58] sm:$0xff]  ;;  %v449_v11 = vpack.c.bf16 %v159_v7, %v158_v5  ;;  %v129_v19 = vld [vmem:[#allocation5 + $0xe8] sm:$0xff] }
  0x37   :  { %v419_v12 = vpack.c.bf16 %v111_v9, %v110_v8  ;;  %v142_v13 = vld [vmem:[#allocation5 + $0x150] sm:$0xff]  ;;  %v143_v14 = vld [vmem:[#allocation5 + $0x158] sm:$0xff]  ;;  %v160_v20 = vld [vmem:[#allocation5 + $0x1e0] sm:$0xff]  ;;  %v421_v21 = vpack.c.bf16 %v129_v19, %v128_v18 }
  0x38   :  { %412 = vmatpush3.bf16.msra.mxu0 %v411_v54  ;;  %v451_v15 = vpack.c.bf16 %v143_v14, %v142_v13  ;;  %v161_v22 = vld [vmem:[#allocation5 + $0x1e8] sm:$0xff]  ;;  %v112_v23 = vld [vmem:[#allocation5 + $0x60] sm:$0xff]  ;;  %v130_v32 = vld [vmem:[#allocation5 + $0xf0] sm:$0xff] }
  0x39   :  { %444 = vmatpush3.bf16.msra.mxu1 %v443_v55  ;;  %414 = vmatprep.subr.bf16.mxu0 %v413_v56  ;;  %v113_v24 = vld [vmem:[#allocation5 + $0x68] sm:$0xff]  ;;  %v453_v25 = vpack.c.bf16 %v161_v22, %v160_v20  ;;  %v144_v27 = vld [vmem:[#allocation5 + $0x160] sm:$0xff]  ;;  %v131_v33 = vld [vmem:[#allocation5 + $0xf8] sm:$0xff] }
  0x3a   :  { %446 = vmatprep.subr.bf16.mxu1 %v445_v59  ;;  %v423_v26 = vpack.c.bf16 %v113_v24, %v112_v23  ;;  %v145_v28 = vld [vmem:[#allocation5 + $0x168] sm:$0xff]  ;;  %v162_v34 = vld [vmem:[#allocation5 + $0x1f0] sm:$0xff]  ;;  %v163_v39 = vld [vmem:[#allocation5 + $0x1f8] sm:$0xff]  ;;  %v425_v44 = vpack.c.bf16 %v131_v33, %v130_v32 }
  0x3b   :  { %v455_v29 = vpack.c.bf16 %v145_v28, %v144_v27  ;;  %v114_v40 = vld [vmem:[#allocation5 + $0x70] sm:$0xff]  ;;  %v115_v41 = vld [vmem:[#allocation5 + $0x78] sm:$0xff]  ;;  %v457_v45 = vpack.c.bf16 %v163_v39, %v162_v34 }
  0x3c   :  { %416 = vmatpush3.bf16.msra.mxu0 %v415_v62  ;;  %v146_v46 = vld [vmem:[#allocation5 + $0x170] sm:$0xff]  ;;  %v147_v47 = vld [vmem:[#allocation5 + $0x178] sm:$0xff]  ;;  %v427_v48 = vpack.c.bf16 %v115_v41, %v114_v40 }
  0x3d   :  { %448 = vmatpush3.bf16.msra.mxu1 %v447_v63  ;;  %418 = vmatprep.subr.bf16.mxu0 %v417_v6  ;;  %v459_v49 = vpack.c.bf16 %v147_v47, %v146_v46 }
  0x3e   :  { %450 = vmatprep.subr.bf16.mxu1 %v449_v11 }
  0x40   :  { %420 = vmatpush3.bf16.msra.mxu0 %v419_v12 }
  0x41   :  { %452 = vmatpush3.bf16.msra.mxu1 %v451_v15  ;;  %422 = vmatprep.subr.bf16.mxu0 %v421_v21 }
  0x42   :  { %454 = vmatprep.subr.bf16.mxu1 %v453_v25 }
  0x44   :  { %424 = vmatpush3.bf16.msra.mxu0 %v423_v26 }
  0x45   :  { %456 = vmatpush3.bf16.msra.mxu1 %v455_v29  ;;  %426 = vmatprep.subr.bf16.mxu0 %v425_v44 }
  0x46   :  { %458 = vmatprep.subr.bf16.mxu1 %v457_v45 }
  0x48   :  { %428 = vmatpush3.bf16.msra.mxu0 %v427_v48 }
  0x49   :  { %460 = vmatpush3.bf16.msra.mxu1 %v459_v49 }
  0x99   :  { %v51_v16 = vpop.permute.xlu1 %50  ;;  %v47_v17 = vpop.permute.xlu0 %46 }
  0x9d   :  { %v53_v30 = vpop.permute.xlu1 %52  ;;  %v49_v31 = vpop.permute.xlu0 %48 }
  0x9e   :  { %v57_v35 = vsel %vm56_vm0, %v51_v16, %v53_v30  ;;  %v60_v36 = vsel %vm56_vm0, %v53_v30, %v47_v17  ;;  %v58_v37 = vsel %vm56_vm0, %v49_v31, %v51_v16  ;;  %v59_v38 = vsel %vm56_vm0, %v47_v17, %v49_v31 }
  0x9f   :  { %v65_v42 = vcombine.low %v60_v36, %v59_v38  ;;  %v66_v43 = vcombine.low %v58_v37, %v57_v35 }
  0xa1   :  { %v69_v50 = vmax.f32 %v597_v1, %v65_v42  ;;  %v70_v52 = vmax.f32 %v595_v0, %v66_v43 }
  0xa3   :  { %77 = vrot.lane.b32.xlu0 %v69_v50, %s547_s1  ;;  %v73_v51 = vcombine.high %v69_v50, %v69_v50  ;;  %v74_v53 = vcombine.high %v70_v52, %v70_v52 }
  0xa5   :  { %79 = vrot.lane.b32.xlu1 %v73_v51, %s547_s1 }
  0xa7   :  { %81 = vrot.lane.b32.xlu0 %v70_v52, %s547_s1 }
  0xa9   :  { %83 = vrot.lane.b32.xlu1 %v74_v53, %s547_s1 }
 0x115   :  { %v78_v54 = vpop.permute.xlu0 %77 }
 0x117   :  { %v80_v55 = vpop.permute.xlu1 %79 }
 0x118   :  { %v88_v1 = vsel %vm85_vm1, %v78_v54, %v80_v55 }
 0x119   :  { %v82_v56 = vpop.permute.xlu0 %81 }
 0x11a   :  { %v87_v58 = vsel %vm85_vm1, %v80_v55, %v82_v56 }
 0x11b   :  { %v84_v57 = vpop.permute.xlu1 %83 }
 0x11c   :  { %v86_v59 = vsel %vm85_vm1, %v82_v56, %v84_v57  ;;  %v89_v60 = vsel %vm85_vm1, %v84_v57, %v78_v54 }
 0x11d   :  { %v94_v61 = vcombine.low %v89_v60, %v88_v1  ;;  %v95_v62 = vcombine.low %v87_v58, %v86_v59 }
 0x11f   :  { %v98_v63 = vmax.f32 %v69_v50, %v94_v61  ;;  %v99_v2 = vmax.f32 %v70_v52, %v95_v62 }
 0x121   :  { %v166_v3 = vcombine.high %v98_v63, %v98_v63  ;;  %v167_v0 = vcombine.high %v99_v2, %v99_v2 }
 0x123   :  { %234 = vmatprep.mubr.f32.mxu0 %v166_v3  ;;  %304 = vmatprep.mubr.f32.mxu1 %v167_v0 }
 0x124   :  { %235 = vmatmul.mubr.f32.vlgmr.msra.gmra.mrb[0].mxu0 %v98_v63  ;;  %305 = vmatmul.mubr.f32.vlgmr.msra.gmra.mrb[0].mxu1 %v99_v2 }
 0x1f7   :  { %v359_v4 = vpop.f32.mrb[0].mxu0  ;;  %v394_v5 = vpop.f32.mrb[0].mxu1 }
 0x1f8   :  { %v360_v6 = vpop.f32.mrb[1].mxu0  ;;  %v395_v7 = vpop.f32.mrb[1].mxu1 }
 0x1f9   :  { %v361_v8 = vadd.f32 %v360_v6, %v359_v4  ;;  %v396_v9 = vadd.f32 %v395_v7, %v394_v5 }
 0x1fb   :  { %v307_v10 = vadd.f32 %v396_v9, %v361_v8 }
 0x1fd   :  { %310 = vst [vmem:[#allocation7] sm:$0xf] %v307_v10 }
 0x1fe   :  { %525 = shalt.err (!%p522_p6)
}
 0x1ff   :  { %s526_s12 = scalar_lea.hbm %s633_s2, 64 }
 0x200   :  { %p527_p7 = scmp.ne.s32.totalorder %s633_s2, %s526_s12  ;;  %p530_p8 = scmp.lt.u32.totalorder %s526_s12, %s633_s2 }
 0x202   :  { %p532_p9 = pnand %p530_p8, %p527_p7 }
 0x204   :  { %535 = shalt.err (!%p532_p9)
}
 0x205   :  { %320 = dma.vmem_to_hbm [thread:$0]  %s318_s8, 64, %s633_s2, [#allocation4]  }
 0x206   :  { %540 = dma.done.wait [#allocation4], 64  }
 0x207   :  { %541 = vsyncadd [#allocation4], 4294967232 }
 0x208   :  { %324 = vsyncpa [#allocation3], 1 }
 0x209   :  { %325 = vsyncpa [#allocation6], 1 }
 0x20a   :  { %326 = vsyncpa [#allocation4], 1 }

</bundles_post_ra>
